<compile_context>
chip_gen: v7x
topology: tpu7x:2x2x1
jax: 0.10.0
libtpu: 0.0.40
codegen_flags: <defaults>
</compile_context>

<pallas_src>
import jax
import jax.numpy as jnp
from jax.experimental import pallas as pl
from jax.experimental.pallas import tpu as pltpu

LANES = 128     # hidden dim padded to this: lane-dense h, MXU-friendly K dim
SUBLANES = 8    # class dim padded only to this: tiny HBM writeback


def _round_up(x, m):
    return ((x + m - 1) // m) * m


def _mlp_kernel(x_ref, w1_ref, b1_ref, w2_ref, b2_ref, o_ref):
    # dense1 (+ folded eval-mode BatchNorm): (TB, d_in) @ (d_in, Hp) + (1, Hp)
    h = jnp.dot(x_ref[...], w1_ref[...],
                preferred_element_type=jnp.float32) + b1_ref[...]
    # ReLU (dropout = identity in eval mode)
    h = jnp.maximum(h, 0.0)
    # dense2: (TB, Hp) @ (Hp, Cs) + (1, Cs); Cs is small (n_class -> 8), so
    # only ~32 B/row ever hit HBM instead of a 512 B/row 128-lane pad.
    o = jnp.dot(h.astype(w2_ref.dtype), w2_ref[...],
                preferred_element_type=jnp.float32) + b2_ref[...]
    o_ref[...] = o.astype(o_ref.dtype)


def prepare_params(params, eps=1e-5, compute_dtype=jnp.float32):
    """One-time parameter prep: fold eval-mode BN into dense1, transpose to
    (K, N), pad hidden dim to 128 lanes and class dim to 8, cast weights to
    the streaming/compute dtype (biases stay f32: added post-accumulation)."""
    w1 = params["w1"].astype(jnp.float32)   # (d_hidd, d_in)
    b1 = params["b1"].astype(jnp.float32)   # (d_hidd,)
    w2 = params["w2"].astype(jnp.float32)   # (n_class, d_hidd)
    b2 = params["b2"].astype(jnp.float32)   # (n_class,)
    d_hidd, d_in = w1.shape
    n_class = w2.shape[0]
    hp = _round_up(d_hidd, LANES)
    cs = _round_up(n_class, SUBLANES)

    # Eval-mode BatchNorm1d as an affine: y = h*scale + shift
    inv_std = 1.0 / jnp.sqrt(params["running_var"].astype(jnp.float32) + eps)
    scale = params["gamma"].astype(jnp.float32) * inv_std
    shift = (params["beta"].astype(jnp.float32)
             - params["running_mean"].astype(jnp.float32) * scale)

    def pack(w1_eff, b1_eff):
        w1p = jnp.zeros((d_in, hp), jnp.float32).at[:, :d_hidd].set(w1_eff.T)
        b1p = jnp.zeros((1, hp), jnp.float32).at[:, :d_hidd].set(b1_eff)
        w2p = jnp.zeros((hp, cs), jnp.float32).at[:d_hidd, :n_class].set(w2.T)
        b2p = jnp.zeros((1, cs), jnp.float32).at[:, :n_class].set(b2)
        return {"w1p": w1p.astype(compute_dtype), "b1p": b1p,
                "w2p": w2p.astype(compute_dtype), "b2p": b2p}

    return {
        # BN folded into dense1: W1' = W1*scale[:,None], b1' = b1*scale + shift
        "norm": pack(w1 * scale[:, None], b1 * scale + shift),
        # len(x) == 1 path: no BatchNorm
        "no_norm": pack(w1, b1),
        "n_class": n_class,
        "d_in": d_in,
    }


def nonlin_classifier_forward(x, prepared, tb=2048):
    """Fused forward pass (eval mode). x: (B, d_in)."""
    B, d_in = x.shape
    assert d_in == prepared["d_in"]
    p = prepared["no_norm"] if B == 1 else prepared["norm"]
    hp = p["w1p"].shape[1]
    cs = p["w2p"].shape[1]

    # Batch tile: multiple of 8 sublanes.  Capped at ceil(B/2) so there are
    # always >= 2 grid steps when B > 8 (both v7x TensorCores engage via
    # dimension_semantics=("parallel",)); saturates at `tb` (2048) for large
    # B so the ~0.35us per-grid-step overhead is amortised.
    TB = min(_round_up(max(tb, SUBLANES), SUBLANES),
             max(SUBLANES, _round_up(pl.cdiv(B, 2), SUBLANES)))
    grid = pl.cdiv(B, TB)

    # No padding copy of x: the last block may read past the end of x, but the
    # garbage rows never contaminate valid rows (rows are independent) and the
    # corresponding out-of-bounds output rows are discarded by Pallas.
    xs = x if x.dtype == p["w1p"].dtype else x.astype(p["w1p"].dtype)

    out = pl.pallas_call(
        _mlp_kernel,
        out_shape=jax.ShapeDtypeStruct((B, cs), jnp.float32),
        grid=(grid,),
        in_specs=[
            pl.BlockSpec((TB, d_in), lambda i: (i, 0)),   # streamed activations
            pl.BlockSpec((d_in, hp), lambda i: (0, 0)),   # resident weights
            pl.BlockSpec((1, hp), lambda i: (0, 0)),
            pl.BlockSpec((hp, cs), lambda i: (0, 0)),
            pl.BlockSpec((1, cs), lambda i: (0, 0)),
        ],
        out_specs=pl.BlockSpec((TB, cs), lambda i: (i, 0)),
        compiler_params=pltpu.CompilerParams(
            dimension_semantics=("parallel",),   # v7x: shard batch over 2 TCs
        ),
    )(xs, p["w1p"], p["b1p"], p["w2p"], p["b2p"])

    return out[:, :prepared["n_class"]]


def init_params(key, d_in, n_class, d_hidd=16):
    """Deterministic synthetic parameters (PyTorch-Linear-style uniform init)."""
    k1, k2, k3, k4 = jax.random.split(key, 4)
    lim1 = 1.0 / jnp.sqrt(d_in)
    lim2 = 1.0 / jnp.sqrt(d_hidd)
    return {
        "w1": jax.random.uniform(k1, (d_hidd, d_in), jnp.float32, -lim1, lim1),
        "b1": jax.random.uniform(k2, (d_hidd,), jnp.float32, -lim1, lim1),
        "w2": jax.random.uniform(k3, (n_class, d_hidd), jnp.float32, -lim2, lim2),
        "b2": jax.random.uniform(k4, (n_class,), jnp.float32, -lim2, lim2),
        "gamma": jnp.ones((d_hidd,), jnp.float32) * 1.1,
        "beta": jnp.full((d_hidd,), 0.05, jnp.float32),
        "running_mean": jnp.full((d_hidd,), 0.02, jnp.float32),
        "running_var": jnp.full((d_hidd,), 0.9, jnp.float32),
    }


def _reference(x, params, eps=1e-5):
    h = x @ params["w1"].T + params["b1"]
    if x.shape[0] > 1:
        inv_std = 1.0 / jnp.sqrt(params["running_var"] + eps)
        h = (h - params["running_mean"]) * inv_std * params["gamma"] + params["beta"]
    h = jnp.maximum(h, 0.0)
    return h @ params["w2"].T + params["b2"]


if __name__ == "__main__":
    key = jax.random.PRNGKey(0)
    kx, kp = jax.random.split(key)

    d_in, d_hidd, n_class = 32, 16, 4
    batch = 8

    params = init_params(kp, d_in, n_class, d_hidd)
    prepared = prepare_params(params)            # one-time prep (BN fold, pad)
    x = jax.random.normal(kx, (batch, d_in), jnp.float32)

    # Batched path (uses BatchNorm), single grid step
    out = jax.block_until_ready(nonlin_classifier_forward(x, prepared))
    ref = _reference(x, params)
    assert out.shape == (batch, n_class)
    assert jnp.allclose(out, ref, atol=1e-5, rtol=1e-5)

    # Single-sample path (len(x) == 1 -> no BatchNorm); partial (OOB) tile
    x1 = x[:1]
    out1 = jax.block_until_ready(nonlin_classifier_forward(x1, prepared))
    ref1 = _reference(x1, params)
    assert out1.shape == (1, n_class)
    assert jnp.allclose(out1, ref1, atol=1e-5, rtol=1e-5)

    # Ragged batch: 2 grid steps, last block reads/writes past the array end
    xg = jax.random.normal(jax.random.PRNGKey(1), (300, d_in), jnp.float32)
    outg = jax.block_until_ready(nonlin_classifier_forward(xg, prepared))
    refg = _reference(xg, params)
    assert outg.shape == (300, n_class)
    assert jnp.allclose(outg, refg, atol=1e-5, rtol=1e-5)
    assert bool(jnp.all(jnp.isfinite(outg)))

    # bf16 streaming path (halves the dominant HBM read stream when x is
    # already bf16); loose tolerance against the f32 reference.
    prepared_bf16 = prepare_params(params, compute_dtype=jnp.bfloat16)
    outb = jax.block_until_ready(
        nonlin_classifier_forward(xg.astype(jnp.bfloat16), prepared_bf16))
    assert outb.shape == (300, n_class)
    assert jnp.allclose(outb, refg, atol=1e-1, rtol=1e-1)

    print("KERNEL_OK")
</pallas_src>

<mosaic_0001>
module attributes {stable_mosaic.version = 11 : i64} {
  func.func @_mlp_kernel(%arg0: i32, %arg1: memref<8x32xf32, #tpu.memory_space<vmem>>, %arg2: memref<32x128xf32, #tpu.memory_space<vmem>>, %arg3: memref<1x128xf32, #tpu.memory_space<vmem>>, %arg4: memref<128x8xf32, #tpu.memory_space<vmem>>, %arg5: memref<1x8xf32, #tpu.memory_space<vmem>>, %arg6: memref<8x8xf32, #tpu.memory_space<vmem>>) attributes {dimension_semantics = [#tpu.dimension_semantics<parallel>], iteration_bounds = array<i64: 1>, scalar_prefetch = 0 : i64, scratch_operands = 0 : i64, tpu.core_type = #tpu.core_type<tc>, window_params = [{transform_indices = @transform_0, window_bounds = array<i64: 8, 32>}, {pipeline_mode = #tpu.pipeline_mode<synchronous>, transform_indices = @transform_1, window_bounds = array<i64: 32, 128>}, {pipeline_mode = #tpu.pipeline_mode<synchronous>, transform_indices = @transform_2, window_bounds = array<i64: 1, 128>}, {pipeline_mode = #tpu.pipeline_mode<synchronous>, transform_indices = @transform_3, window_bounds = array<i64: 128, 8>}, {pipeline_mode = #tpu.pipeline_mode<synchronous>, transform_indices = @transform_4, window_bounds = array<i64: 1, 8>}, {transform_indices = @transform_5, window_bounds = array<i64: 8, 8>}]} {
    %c0 = arith.constant 0 : index
    %c0_0 = arith.constant 0 : index
    %0 = vector.load %arg1[%c0, %c0_0] : memref<8x32xf32, #tpu.memory_space<vmem>>, vector<8x32xf32>
    %c0_1 = arith.constant 0 : index
    %c0_2 = arith.constant 0 : index
    %1 = vector.load %arg2[%c0_1, %c0_2] : memref<32x128xf32, #tpu.memory_space<vmem>>, vector<32x128xf32>
    %cst = arith.constant dense<0.000000e+00> : vector<8x128xf32>
    %2 = tpu.matmul %0, %1, %cst {dimension_numbers = #tpu.dot_dimension_numbers<[1], [0], [0], [1], [0, 0, 1, 1], [], []>} : vector<8x32xf32>, vector<32x128xf32>, vector<8x128xf32> -> vector<8x128xf32>
    %c0_3 = arith.constant 0 : index
    %c0_4 = arith.constant 0 : index
    %3 = vector.load %arg3[%c0_3, %c0_4] : memref<1x128xf32, #tpu.memory_space<vmem>>, vector<1x128xf32>
    %4 = vector.broadcast %3 : vector<1x128xf32> to vector<8x128xf32>
    %5 = arith.addf %2, %4 : vector<8x128xf32>
    %cst_5 = arith.constant 0.000000e+00 : f32
    %6 = vector.broadcast %cst_5 : f32 to vector<8x128xf32>
    %7 = arith.maximumf %5, %6 : vector<8x128xf32>
    %c0_6 = arith.constant 0 : index
    %c0_7 = arith.constant 0 : index
    %8 = vector.load %arg4[%c0_6, %c0_7] : memref<128x8xf32, #tpu.memory_space<vmem>>, vector<128x8xf32>
    %cst_8 = arith.constant dense<0.000000e+00> : vector<8x8xf32>
    %9 = tpu.matmul %7, %8, %cst_8 {dimension_numbers = #tpu.dot_dimension_numbers<[1], [0], [0], [1], [0, 0, 1, 1], [], []>} : vector<8x128xf32>, vector<128x8xf32>, vector<8x8xf32> -> vector<8x8xf32>
    %c0_9 = arith.constant 0 : index
    %c0_10 = arith.constant 0 : index
    %10 = vector.load %arg5[%c0_9, %c0_10] : memref<1x8xf32, #tpu.memory_space<vmem>>, vector<1x8xf32>
    %11 = vector.broadcast %10 : vector<1x8xf32> to vector<8x8xf32>
    %12 = arith.addf %9, %11 : vector<8x8xf32>
    %c0_11 = arith.constant 0 : index
    %c0_12 = arith.constant 0 : index
    %13 = vector.load %arg6[%c0_11, %c0_12] : memref<8x8xf32, #tpu.memory_space<vmem>>, vector<8x8xf32>
    tpu.vector_store %arg6[%c0_11, %c0_12], %12 {strides = array<i32>} : memref<8x8xf32, #tpu.memory_space<vmem>>, vector<8x8xf32>,
    return
  }
  func.func @transform_0(%arg0: i32) -> (i32, i32) {
    %c0_i32 = arith.constant 0 : i32
    %c0_i32_0 = arith.constant 0 : i32
    return %arg0, %c0_i32 : i32, i32
  }
  func.func @transform_1(%arg0: i32) -> (i32, i32) {
    %c0_i32 = arith.constant 0 : i32
    %c0_i32_0 = arith.constant 0 : i32
    %c0_i32_1 = arith.constant 0 : i32
    return %c0_i32, %c0_i32_0 : i32, i32
  }
  func.func @transform_2(%arg0: i32) -> (i32, i32) {
    %c0_i32 = arith.constant 0 : i32
    %c0_i32_0 = arith.constant 0 : i32
    %c0_i32_1 = arith.constant 0 : i32
    return %c0_i32, %c0_i32_0 : i32, i32
  }
  func.func @transform_3(%arg0: i32) -> (i32, i32) {
    %c0_i32 = arith.constant 0 : i32
    %c0_i32_0 = arith.constant 0 : i32
    %c0_i32_1 = arith.constant 0 : i32
    return %c0_i32, %c0_i32_0 : i32, i32
  }
  func.func @transform_4(%arg0: i32) -> (i32, i32) {
    %c0_i32 = arith.constant 0 : i32
    %c0_i32_0 = arith.constant 0 : i32
    %c0_i32_1 = arith.constant 0 : i32
    return %c0_i32, %c0_i32_0 : i32, i32
  }
  func.func @transform_5(%arg0: i32) -> (i32, i32) {
    %c0_i32 = arith.constant 0 : i32
    %c0_i32_0 = arith.constant 0 : i32
    return %arg0, %c0_i32 : i32, i32
  }
}

</mosaic_0001>

<bundles_post_ra>
// kernel: tpu_custom_call.1
= control target key start
LH: loop header
LB: loop body
LE: loop exit
PB: predicated region body
PF: predicated region fallthrough
CT: control target
= control target key end

     0   :  { %v346_v3 = vmov 0.0|0.0   ;;  %vm347_vm0 = vmmov 0   ;;  %v348_v6 = vmov 0.0   ;;  %s461_s0 = inlined_call_operand.vmem [shape: f32[8,32], index: 0, kind: input, shape index: {}]   ;;  %s462_s1 = inlined_call_operand.vmem [shape: f32[32,128], index: 1, kind: input, shape index: {}]   ;;  %s463_s2 = inlined_call_operand.vmem [shape: f32[1,128], index: 2, kind: input, shape index: {}]   ;;  %s464_s3 = inlined_call_operand.vmem [shape: f32[128,8], index: 3, kind: input, shape index: {}]   ;;  %s465_s4 = inlined_call_operand.vmem [shape: f32[1,8], index: 4, kind: input, shape index: {}]   ;;  %s466_s5 = inlined_call_operand.hbm [shape: f32[8,8], index: 5, kind: output, shape index: {}]  }
   0x1   :  { %v22_v0 = vld [vmem:[%s462_s1] sm:$0xff]  ;;  %v23_v1 = vld [vmem:[%s462_s1 + $0x8] sm:$0xff]  ;;  %v24_v2 = vld [vmem:[%s462_s1 + $0x10] sm:$0xff]  ;;  %288 = vmatprep.subr.bf16.mxu0 %v346_v3  ;;  %250 = vmatprep.mubr.msk.f32.mxu0 %vm347_vm0, %v348_v6 }
   0x2   :  { %v289_v4 = vpack.c.bf16 %v23_v1, %v22_v0  ;;  %v25_v5 = vld [vmem:[%s462_s1 + $0x18] sm:$0xff]  ;;  %v108_v7 = vld [vmem:[%s464_s3] sm:$0xff]  ;;  %294 = vmatprep.subr.bf16.mxu1 %v346_v3  ;;  %v109_v8 = vld [vmem:[%s464_s3 + $0x8] sm:$0xff]  ;;  %285 = vmatprep.mubr.msk.f32.mxu1 %vm347_vm0, %v348_v6 }
   0x3   :  { %v110_v9 = vld [vmem:[%s464_s3 + $0x10] sm:$0xff]  ;;  %v111_v10 = vld [vmem:[%s464_s3 + $0x18] sm:$0xff]  ;;  %v292_v11 = vpack.c.bf16 %v25_v5, %v24_v2  ;;  %v295_v12 = vpack.c.bf16 %v109_v8, %v108_v7  ;;  %v112_v14 = vld [vmem:[%s464_s3 + $0x20] sm:$0xff] }
   0x4   :  { %290 = vmatpush3.bf16.msra.mxu0 %v289_v4  ;;  %v298_v13 = vpack.c.bf16 %v111_v10, %v110_v9  ;;  %v113_v15 = vld [vmem:[%s464_s3 + $0x28] sm:$0xff] }
   0x5   :  { %291 = vmatprep.subr.bf16.mxu0 %v346_v3  ;;  %296 = vmatpush3.bf16.msra.mxu1 %v295_v12 }
   0x6   :  { %297 = vmatprep.subr.bf16.mxu1 %v346_v3 }
   0x7   :  { %10 = vsyncpa [#allocation3], 0  ;;  %v21_v16 = vld [vmem:[%s461_s0] sm:$0xff]  ;;  %vm33_vm1 = vcmask 261120   ;;  %v301_v17 = vpack.c.bf16 %v113_v15, %v112_v14  ;;  %v114_v18 = vld [vmem:[%s464_s3 + $0x30] sm:$0xff]  ;;  %s349_s11 = smov [#allocation2]  }
   0x8   :  { %293 = vmatpush3.bf16.msra.mxu0 %v292_v11  ;;  %v115_v19 = vld [vmem:[%s464_s3 + $0x38] sm:$0xff]  ;;  %v116_v21 = vld [vmem:[%s464_s3 + $0x40] sm:$0xff]  ;;  %v117_v22 = vld [vmem:[%s464_s3 + $0x48] sm:$0xff]  ;;  %s209_s12 = sshll.u32 %s349_s11, 4  ;;  %vm201_vm2 = vcmask 64512   ;;  %s210_s12 = int_to_ptr.vmem [resolvable:$true] %s209_s12 }
   0x9   :  { %299 = vmatpush3.bf16.msra.mxu1 %v298_v13  ;;  %v304_v20 = vpack.c.bf16 %v115_v19, %v114_v18  ;;  %v307_v23 = vpack.c.bf16 %v117_v22, %v116_v21  ;;  %v118_v24 = vld [vmem:[%s464_s3 + $0x50] sm:$0xff]  ;;  %v119_v25 = vld [vmem:[%s464_s3 + $0x58] sm:$0xff]  ;;  %v120_v27 = vld [vmem:[%s464_s3 + $0x60] sm:$0xff]  ;;  %p327_p1 = scmp.lt.s32.totalorder %s210_s12, %s210_s12 }
   0xa   :  { %300 = vmatprep.subr.bf16.mxu1 %v346_v3  ;;  %v310_v26 = vpack.c.bf16 %v119_v25, %v118_v24  ;;  %v121_v28 = vld [vmem:[%s464_s3 + $0x68] sm:$0xff]  ;;  %v122_v30 = vld [vmem:[%s464_s3 + $0x70] sm:$0xff]  ;;  %v123_v31 = vld [vmem:[%s464_s3 + $0x78] sm:$0xff]  ;;  %s322_s3 = scalar_lea.vmem %s210_s12, 128 }
   0xb   :  { %251 = vmatmul.mubr.msk.f32.vlgmr.msra.gmra.mrb[0].mxu0 %vm33_vm1, %v21_v16  ;;  %v313_v29 = vpack.c.bf16 %v121_v28, %v120_v27  ;;  %v316_v32 = vpack.c.bf16 %v123_v31, %v122_v30  ;;  %v217_v33 = vld [vmem:[%s463_s2] ss:$0 sm:$0xff]  ;;  %p323_p0 = scmp.ne.s32.totalorder %s210_s12, %s322_s3  ;;  %p328_p2 = scmp.lt.s32.totalorder %s322_s3, %s322_s3 }
   0xc   :  { %v219_v38 = vld [vmem:[%s465_s4] ss:$0 sm:$0xff] }
   0xd   :  { %302 = vmatpush3.bf16.msra.mxu1 %v301_v17  ;;  %p329_p3 = por %p328_p2, %p327_p1 }
   0xe   :  { %303 = vmatprep.subr.bf16.mxu1 %v346_v3 }
   0xf   :  { %p330_p4 = pnand %p329_p3, %p323_p0 }
  0x11   :  { %305 = vmatpush3.bf16.msra.mxu1 %v304_v20 }
  0x12   :  { %306 = vmatprep.subr.bf16.mxu1 %v346_v3 }
  0x15   :  { %308 = vmatpush3.bf16.msra.mxu1 %v307_v23 }
  0x16   :  { %309 = vmatprep.subr.bf16.mxu1 %v346_v3 }
  0x19   :  { %311 = vmatpush3.bf16.msra.mxu1 %v310_v26 }
  0x1a   :  { %312 = vmatprep.subr.bf16.mxu1 %v346_v3 }
  0x1d   :  { %314 = vmatpush3.bf16.msra.mxu1 %v313_v29 }
  0x1e   :  { %315 = vmatprep.subr.bf16.mxu1 %v346_v3 }
  0x21   :  { %317 = vmatpush3.bf16.msra.mxu1 %v316_v32 }
  0xde   :  { %v103_v34 = vpop.f32.mrb[0].mxu0 }
  0xdf   :  { %v104_v35 = vadd.f32 %v217_v33, %v103_v34  ;;  %v252_v36 = vpop.f32.mrb[1].mxu0 }
  0xe1   :  { %v107_v37 = vmax.f32 %v104_v35, 0.0 }
  0xe3   :  { %286 = vmatmul.mubr.f32.vlgmr.msra.gmra.mrb[0].mxu1 %v107_v37 }
 0x1b6   :  { %v197_v39 = vpop.f32.mrb[0].mxu1 }
 0x1b7   :  { %v198_v40 = vadd.f32 %v219_v38, %v197_v39  ;;  %v287_v41 = vpop.f32.mrb[1].mxu1 }
 0x1b9   :  { %202 = vst.msk [vmem:[#allocation2] sm:$0xff] %vm201_vm2, %v198_v40 }
 0x1ba   :  { %333 = shalt.err (!%p330_p4)
}
 0x1bb   :  { %s334_s14 = scalar_lea.hbm %s466_s5, 128 }
 0x1bc   :  { %p335_p5 = scmp.ne.s32.totalorder %s466_s5, %s334_s14  ;;  %p338_p6 = scmp.lt.u32.totalorder %s334_s14, %s466_s5 }
 0x1be   :  { %p340_p7 = pnand %p338_p6, %p335_p5 }
 0x1c0   :  { %343 = shalt.err (!%p340_p7)
}
 0x1c1   :  { %212 = dma.vmem_to_hbm [thread:$0]  %s210_s12, 128, %s466_s5, [#allocation3]  }
 0x1c2   :  { %344 = dma.done.wait [#allocation3], 128  }
 0x1c3   :  { %345 = vsyncadd [#allocation3], 4294967168 }
 0x1c4   :  { %216 = vsyncpa [#allocation3], 1 }

</bundles_post_ra>
